<compile_context>
chip_gen: v5e
topology: v5e:2x2
jax: 0.10.0
libtpu: 0.0.40
codegen_flags: <defaults>
</compile_context>

<pallas_src>
import jax
import jax.numpy as jnp
from jax.experimental import pallas as pl
from jax.experimental.pallas import tpu as pltpu

HIDDEN_LAYERS = [64, 128, 256, 128, 64]
INPUT_SIZE = 21
OUTPUT_SIZE = 6

IN_PAD = 32    # sublane-pad 21 -> 32 (multiple of 8); extra rows of W0 are zero
OUT_PAD = 128  # lane-pad 6 -> 128 so output stores are full, unmasked vst


def _round_up(n, m):
    return (n + m - 1) // m * m


def _mlp_kernel(x_ref,
                w0, b0, w1, b1, w2, b2, w3, b3, w4, b4, w5, b5,
                out_ref):
    """Fused 6-layer MLP on one batch tile.

    bf16 operands feed the MXU, accumulation is f32; bias add + ReLU run on the
    VPU in f32 (v5e has no bf16 VPU), then activations are cast back to bf16
    just before the next matmul.
    """
    h = x_ref[...]                                                 # (TB, 32) bf16
    h = jnp.maximum(
        jnp.dot(h, w0[...], preferred_element_type=jnp.float32) + b0[...], 0.0)
    h = jnp.maximum(
        jnp.dot(h.astype(jnp.bfloat16), w1[...],
                preferred_element_type=jnp.float32) + b1[...], 0.0)
    h = jnp.maximum(
        jnp.dot(h.astype(jnp.bfloat16), w2[...],
                preferred_element_type=jnp.float32) + b2[...], 0.0)
    h = jnp.maximum(
        jnp.dot(h.astype(jnp.bfloat16), w3[...],
                preferred_element_type=jnp.float32) + b3[...], 0.0)
    h = jnp.maximum(
        jnp.dot(h.astype(jnp.bfloat16), w4[...],
                preferred_element_type=jnp.float32) + b4[...], 0.0)
    # final linear (no activation); lane-padded output (TB, 128), f32
    out_ref[...] = (jnp.dot(h.astype(jnp.bfloat16), w5[...],
                            preferred_element_type=jnp.float32) + b5[...])


def init_params(key, input_size=INPUT_SIZE, output_size=OUTPUT_SIZE,
                hidden_layers=HIDDEN_LAYERS):
    """PyTorch-style uniform(+-1/sqrt(fan_in)) init.

    Returns list of (W, b) with W: (in, out), b: (1, out), float32 (logical,
    unpadded shapes).
    """
    sizes = [input_size] + list(hidden_layers) + [output_size]
    params = []
    for i in range(len(sizes) - 1):
        fan_in, fan_out = sizes[i], sizes[i + 1]
        key, kw, kb = jax.random.split(key, 3)
        bound = 1.0 / (fan_in ** 0.5)
        w = jax.random.uniform(kw, (fan_in, fan_out), jnp.float32, -bound, bound)
        b = jax.random.uniform(kb, (1, fan_out), jnp.float32, -bound, bound)
        params.append((w, b))
    return params


def prepare_params(params):
    """Pad first/last layer to lane/sublane boundaries and cast weights to bf16.

    Biases stay f32 (added to the f32 accumulator on the VPU)."""
    padded = []
    # layer 0: pad input dim 21 -> IN_PAD with zero rows
    w0, b0 = params[0]
    w0p = jnp.zeros((IN_PAD, w0.shape[1]), jnp.float32).at[:w0.shape[0], :].set(w0)
    padded.append((w0p.astype(jnp.bfloat16), b0))
    # middle layers: already 8/128-friendly
    for w, b in params[1:-1]:
        padded.append((w.astype(jnp.bfloat16), b))
    # last layer: pad output dim 6 -> OUT_PAD with zero columns
    w5, b5 = params[-1]
    w5p = jnp.zeros((w5.shape[0], OUT_PAD), jnp.float32).at[:, :w5.shape[1]].set(w5)
    b5p = jnp.zeros((1, OUT_PAD), jnp.float32).at[:, :b5.shape[1]].set(b5)
    padded.append((w5p.astype(jnp.bfloat16), b5p))
    return padded


def neural_net_forward(x, params, *, tb=256):
    """Full MLP forward in one pallas_call with a batch grid.

    x: (batch, INPUT_SIZE) float32. Returns (batch, OUTPUT_SIZE) float32.
    """
    batch, feat = x.shape
    assert feat == INPUT_SIZE

    padded_params = prepare_params(params)

    # Batch tile: multiple of 8; don't over-pad tiny batches.
    tb = min(tb, _round_up(batch, 8))
    b_pad = _round_up(batch, tb)

    # Zero-pad x to (b_pad, IN_PAD); extra rows/cols are zero so they only
    # produce garbage-free padded output rows that get sliced off below.
    x_pad = jnp.zeros((b_pad, IN_PAD), jnp.float32)
    x_pad = x_pad.at[:batch, :feat].set(x.astype(jnp.float32))
    x_pad = x_pad.astype(jnp.bfloat16)

    flat_params = []
    in_specs = [pl.BlockSpec((tb, IN_PAD), lambda i: (i, 0))]
    for w, b in padded_params:
        flat_params.append(w)
        flat_params.append(b)
        # full-array blocks, constant index_map -> resident across grid steps
        in_specs.append(pl.BlockSpec(w.shape, lambda i: (0, 0)))
        in_specs.append(pl.BlockSpec(b.shape, lambda i: (0, 0)))

    sizes = [IN_PAD] + list(HIDDEN_LAYERS) + [OUT_PAD]
    flops = 2 * b_pad * sum(a * b for a, b in zip(sizes[:-1], sizes[1:]))
    bytes_accessed = (x_pad.size * x_pad.dtype.itemsize
                      + sum(p.size * p.dtype.itemsize for p in flat_params)
                      + b_pad * OUT_PAD * 4)

    out_pad = pl.pallas_call(
        _mlp_kernel,
        out_shape=jax.ShapeDtypeStruct((b_pad, OUT_PAD), jnp.float32),
        grid=(b_pad // tb,),
        in_specs=in_specs,
        out_specs=pl.BlockSpec((tb, OUT_PAD), lambda i: (i, 0)),
        compiler_params=pltpu.CompilerParams(
            dimension_semantics=("parallel",)),
        cost_estimate=pl.CostEstimate(
            flops=flops, transcendentals=0, bytes_accessed=bytes_accessed),
    )(x_pad, *flat_params)

    return out_pad[:batch, :OUTPUT_SIZE]


def _reference_forward_bf16(x, params):
    """Pure-JAX reference with numerics matching the kernel (bf16 operands,
    f32 accumulation)."""
    h = x.astype(jnp.bfloat16)
    for i, (w, b) in enumerate(params):
        h = jnp.dot(h, w.astype(jnp.bfloat16),
                    preferred_element_type=jnp.float32) + b
        if i < len(params) - 1:
            h = jnp.maximum(h, 0.0).astype(jnp.bfloat16)
    return h


def _reference_forward_f32(x, params):
    h = x
    for i, (w, b) in enumerate(params):
        h = h @ w + b
        if i < len(params) - 1:
            h = jnp.maximum(h, 0.0)
    return h


if __name__ == "__main__":
    key = jax.random.PRNGKey(0)
    key, kx = jax.random.split(key)

    batch = 8
    x = jax.random.normal(kx, (batch, INPUT_SIZE), jnp.float32)

    params = init_params(jax.random.PRNGKey(0))

    out = neural_net_forward(x, params)
    out = jax.block_until_ready(out)

    assert out.shape == (batch, OUTPUT_SIZE)

    # tight check against a numerics-matched (bf16 operand / f32 accum) reference
    ref_bf16 = _reference_forward_bf16(x, params)
    assert jnp.allclose(out, ref_bf16, atol=2e-2, rtol=2e-2)

    # loose sanity check against the full-f32 reference
    ref_f32 = _reference_forward_f32(x, params)
    assert jnp.allclose(out, ref_f32, atol=6e-2, rtol=6e-2)

    print("KERNEL_OK")
</pallas_src>

<mosaic_0001>
module attributes {stable_mosaic.version = 11 : i64} {
  func.func @_mlp_kernel(%arg0: i32, %arg1: memref<8x32xbf16, #tpu.memory_space<vmem>>, %arg2: memref<32x64xbf16, #tpu.memory_space<vmem>>, %arg3: memref<1x64xf32, #tpu.memory_space<vmem>>, %arg4: memref<64x128xbf16, #tpu.memory_space<vmem>>, %arg5: memref<1x128xf32, #tpu.memory_space<vmem>>, %arg6: memref<128x256xbf16, #tpu.memory_space<vmem>>, %arg7: memref<1x256xf32, #tpu.memory_space<vmem>>, %arg8: memref<256x128xbf16, #tpu.memory_space<vmem>>, %arg9: memref<1x128xf32, #tpu.memory_space<vmem>>, %arg10: memref<128x64xbf16, #tpu.memory_space<vmem>>, %arg11: memref<1x64xf32, #tpu.memory_space<vmem>>, %arg12: memref<64x128xbf16, #tpu.memory_space<vmem>>, %arg13: memref<1x128xf32, #tpu.memory_space<vmem>>, %arg14: memref<8x128xf32, #tpu.memory_space<vmem>>) attributes {dimension_semantics = [#tpu.dimension_semantics<parallel>], iteration_bounds = array<i64: 1>, scalar_prefetch = 0 : i64, scratch_operands = 0 : i64, tpu.core_type = #tpu.core_type<tc>, window_params = [{transform_indices = @transform_0, window_bounds = array<i64: 8, 32>}, {pipeline_mode = #tpu.pipeline_mode<synchronous>, transform_indices = @transform_1, window_bounds = array<i64: 32, 64>}, {pipeline_mode = #tpu.pipeline_mode<synchronous>, transform_indices = @transform_2, window_bounds = array<i64: 1, 64>}, {pipeline_mode = #tpu.pipeline_mode<synchronous>, transform_indices = @transform_3, window_bounds = array<i64: 64, 128>}, {pipeline_mode = #tpu.pipeline_mode<synchronous>, transform_indices = @transform_4, window_bounds = array<i64: 1, 128>}, {pipeline_mode = #tpu.pipeline_mode<synchronous>, transform_indices = @transform_5, window_bounds = array<i64: 128, 256>}, {pipeline_mode = #tpu.pipeline_mode<synchronous>, transform_indices = @transform_6, window_bounds = array<i64: 1, 256>}, {pipeline_mode = #tpu.pipeline_mode<synchronous>, transform_indices = @transform_7, window_bounds = array<i64: 256, 128>}, {pipeline_mode = #tpu.pipeline_mode<synchronous>, transform_indices = @transform_8, window_bounds = array<i64: 1, 128>}, {pipeline_mode = #tpu.pipeline_mode<synchronous>, transform_indices = @transform_9, window_bounds = array<i64: 128, 64>}, {pipeline_mode = #tpu.pipeline_mode<synchronous>, transform_indices = @transform_10, window_bounds = array<i64: 1, 64>}, {pipeline_mode = #tpu.pipeline_mode<synchronous>, transform_indices = @transform_11, window_bounds = array<i64: 64, 128>}, {pipeline_mode = #tpu.pipeline_mode<synchronous>, transform_indices = @transform_12, window_bounds = array<i64: 1, 128>}, {transform_indices = @transform_13, window_bounds = array<i64: 8, 128>}]} {
    %c0 = arith.constant 0 : index
    %c0_0 = arith.constant 0 : index
    %0 = vector.load %arg1[%c0, %c0_0] : memref<8x32xbf16, #tpu.memory_space<vmem>>, vector<8x32xbf16>
    %c0_1 = arith.constant 0 : index
    %c0_2 = arith.constant 0 : index
    %1 = vector.load %arg2[%c0_1, %c0_2] : memref<32x64xbf16, #tpu.memory_space<vmem>>, vector<32x64xbf16>
    %cst = arith.constant dense<0.000000e+00> : vector<8x64xf32>
    %2 = tpu.matmul %0, %1, %cst {dimension_numbers = #tpu.dot_dimension_numbers<[1], [0], [0], [1], [0, 0, 1, 1], [], []>} : vector<8x32xbf16>, vector<32x64xbf16>, vector<8x64xf32> -> vector<8x64xf32>
    %c0_3 = arith.constant 0 : index
    %c0_4 = arith.constant 0 : index
    %3 = vector.load %arg3[%c0_3, %c0_4] : memref<1x64xf32, #tpu.memory_space<vmem>>, vector<1x64xf32>
    %4 = vector.broadcast %3 : vector<1x64xf32> to vector<8x64xf32>
    %5 = arith.addf %2, %4 : vector<8x64xf32>
    %cst_5 = arith.constant 0.000000e+00 : f32
    %6 = vector.broadcast %cst_5 : f32 to vector<8x64xf32>
    %7 = arith.maximumf %5, %6 : vector<8x64xf32>
    %8 = arith.truncf %7 : vector<8x64xf32> to vector<8x64xbf16>
    %c0_6 = arith.constant 0 : index
    %c0_7 = arith.constant 0 : index
    %9 = vector.load %arg4[%c0_6, %c0_7] : memref<64x128xbf16, #tpu.memory_space<vmem>>, vector<64x128xbf16>
    %cst_8 = arith.constant dense<0.000000e+00> : vector<8x128xf32>
    %10 = tpu.matmul %8, %9, %cst_8 {dimension_numbers = #tpu.dot_dimension_numbers<[1], [0], [0], [1], [0, 0, 1, 1], [], []>} : vector<8x64xbf16>, vector<64x128xbf16>, vector<8x128xf32> -> vector<8x128xf32>
    %c0_9 = arith.constant 0 : index
    %c0_10 = arith.constant 0 : index
    %11 = vector.load %arg5[%c0_9, %c0_10] : memref<1x128xf32, #tpu.memory_space<vmem>>, vector<1x128xf32>
    %12 = vector.broadcast %11 : vector<1x128xf32> to vector<8x128xf32>
    %13 = arith.addf %10, %12 : vector<8x128xf32>
    %cst_11 = arith.constant 0.000000e+00 : f32
    %14 = vector.broadcast %cst_11 : f32 to vector<8x128xf32>
    %15 = arith.maximumf %13, %14 : vector<8x128xf32>
    %16 = arith.truncf %15 : vector<8x128xf32> to vector<8x128xbf16>
    %c0_12 = arith.constant 0 : index
    %c0_13 = arith.constant 0 : index
    %17 = vector.load %arg6[%c0_12, %c0_13] : memref<128x256xbf16, #tpu.memory_space<vmem>>, vector<128x256xbf16>
    %cst_14 = arith.constant dense<0.000000e+00> : vector<8x256xf32>
    %18 = tpu.matmul %16, %17, %cst_14 {dimension_numbers = #tpu.dot_dimension_numbers<[1], [0], [0], [1], [0, 0, 1, 1], [], []>} : vector<8x128xbf16>, vector<128x256xbf16>, vector<8x256xf32> -> vector<8x256xf32>
    %c0_15 = arith.constant 0 : index
    %c0_16 = arith.constant 0 : index
    %19 = vector.load %arg7[%c0_15, %c0_16] : memref<1x256xf32, #tpu.memory_space<vmem>>, vector<1x256xf32>
    %20 = vector.broadcast %19 : vector<1x256xf32> to vector<8x256xf32>
    %21 = arith.addf %18, %20 : vector<8x256xf32>
    %cst_17 = arith.constant 0.000000e+00 : f32
    %22 = vector.broadcast %cst_17 : f32 to vector<8x256xf32>
    %23 = arith.maximumf %21, %22 : vector<8x256xf32>
    %24 = arith.truncf %23 : vector<8x256xf32> to vector<8x256xbf16>
    %c0_18 = arith.constant 0 : index
    %c0_19 = arith.constant 0 : index
    %25 = vector.load %arg8[%c0_18, %c0_19] : memref<256x128xbf16, #tpu.memory_space<vmem>>, vector<256x128xbf16>
    %cst_20 = arith.constant dense<0.000000e+00> : vector<8x128xf32>
    %26 = tpu.matmul %24, %25, %cst_20 {dimension_numbers = #tpu.dot_dimension_numbers<[1], [0], [0], [1], [0, 0, 1, 1], [], []>} : vector<8x256xbf16>, vector<256x128xbf16>, vector<8x128xf32> -> vector<8x128xf32>
    %c0_21 = arith.constant 0 : index
    %c0_22 = arith.constant 0 : index
    %27 = vector.load %arg9[%c0_21, %c0_22] : memref<1x128xf32, #tpu.memory_space<vmem>>, vector<1x128xf32>
    %28 = vector.broadcast %27 : vector<1x128xf32> to vector<8x128xf32>
    %29 = arith.addf %26, %28 : vector<8x128xf32>
    %cst_23 = arith.constant 0.000000e+00 : f32
    %30 = vector.broadcast %cst_23 : f32 to vector<8x128xf32>
    %31 = arith.maximumf %29, %30 : vector<8x128xf32>
    %32 = arith.truncf %31 : vector<8x128xf32> to vector<8x128xbf16>
    %c0_24 = arith.constant 0 : index
    %c0_25 = arith.constant 0 : index
    %33 = vector.load %arg10[%c0_24, %c0_25] : memref<128x64xbf16, #tpu.memory_space<vmem>>, vector<128x64xbf16>
    %cst_26 = arith.constant dense<0.000000e+00> : vector<8x64xf32>
    %34 = tpu.matmul %32, %33, %cst_26 {dimension_numbers = #tpu.dot_dimension_numbers<[1], [0], [0], [1], [0, 0, 1, 1], [], []>} : vector<8x128xbf16>, vector<128x64xbf16>, vector<8x64xf32> -> vector<8x64xf32>
    %c0_27 = arith.constant 0 : index
    %c0_28 = arith.constant 0 : index
    %35 = vector.load %arg11[%c0_27, %c0_28] : memref<1x64xf32, #tpu.memory_space<vmem>>, vector<1x64xf32>
    %36 = vector.broadcast %35 : vector<1x64xf32> to vector<8x64xf32>
    %37 = arith.addf %34, %36 : vector<8x64xf32>
    %cst_29 = arith.constant 0.000000e+00 : f32
    %38 = vector.broadcast %cst_29 : f32 to vector<8x64xf32>
    %39 = arith.maximumf %37, %38 : vector<8x64xf32>
    %40 = arith.truncf %39 : vector<8x64xf32> to vector<8x64xbf16>
    %c0_30 = arith.constant 0 : index
    %c0_31 = arith.constant 0 : index
    %41 = vector.load %arg12[%c0_30, %c0_31] : memref<64x128xbf16, #tpu.memory_space<vmem>>, vector<64x128xbf16>
    %cst_32 = arith.constant dense<0.000000e+00> : vector<8x128xf32>
    %42 = tpu.matmul %40, %41, %cst_32 {dimension_numbers = #tpu.dot_dimension_numbers<[1], [0], [0], [1], [0, 0, 1, 1], [], []>} : vector<8x64xbf16>, vector<64x128xbf16>, vector<8x128xf32> -> vector<8x128xf32>
    %c0_33 = arith.constant 0 : index
    %c0_34 = arith.constant 0 : index
    %43 = vector.load %arg13[%c0_33, %c0_34] : memref<1x128xf32, #tpu.memory_space<vmem>>, vector<1x128xf32>
    %44 = vector.broadcast %43 : vector<1x128xf32> to vector<8x128xf32>
    %45 = arith.addf %42, %44 : vector<8x128xf32>
    %c0_35 = arith.constant 0 : index
    %c0_36 = arith.constant 0 : index
    %46 = vector.load %arg14[%c0_35, %c0_36] : memref<8x128xf32, #tpu.memory_space<vmem>>, vector<8x128xf32>
    tpu.vector_store %arg14[%c0_35, %c0_36], %45 {strides = array<i32>} : memref<8x128xf32, #tpu.memory_space<vmem>>, vector<8x128xf32>,
    return
  }
  func.func @transform_0(%arg0: i32) -> (i32, i32) {
    %c0_i32 = arith.constant 0 : i32
    %c0_i32_0 = arith.constant 0 : i32
    return %arg0, %c0_i32 : i32, i32
  }
  func.func @transform_1(%arg0: i32) -> (i32, i32) {
    %c0_i32 = arith.constant 0 : i32
    %c0_i32_0 = arith.constant 0 : i32
    %c0_i32_1 = arith.constant 0 : i32
    return %c0_i32, %c0_i32_0 : i32, i32
  }
  func.func @transform_2(%arg0: i32) -> (i32, i32) {
    %c0_i32 = arith.constant 0 : i32
    %c0_i32_0 = arith.constant 0 : i32
    %c0_i32_1 = arith.constant 0 : i32
    return %c0_i32, %c0_i32_0 : i32, i32
  }
  func.func @transform_3(%arg0: i32) -> (i32, i32) {
    %c0_i32 = arith.constant 0 : i32
    %c0_i32_0 = arith.constant 0 : i32
    %c0_i32_1 = arith.constant 0 : i32
    return %c0_i32, %c0_i32_0 : i32, i32
  }
  func.func @transform_4(%arg0: i32) -> (i32, i32) {
    %c0_i32 = arith.constant 0 : i32
    %c0_i32_0 = arith.constant 0 : i32
    %c0_i32_1 = arith.constant 0 : i32
    return %c0_i32, %c0_i32_0 : i32, i32
  }
  func.func @transform_5(%arg0: i32) -> (i32, i32) {
    %c0_i32 = arith.constant 0 : i32
    %c0_i32_0 = arith.constant 0 : i32
    %c0_i32_1 = arith.constant 0 : i32
    return %c0_i32, %c0_i32_0 : i32, i32
  }
  func.func @transform_6(%arg0: i32) -> (i32, i32) {
    %c0_i32 = arith.constant 0 : i32
    %c0_i32_0 = arith.constant 0 : i32
    %c0_i32_1 = arith.constant 0 : i32
    return %c0_i32, %c0_i32_0 : i32, i32
  }
  func.func @transform_7(%arg0: i32) -> (i32, i32) {
    %c0_i32 = arith.constant 0 : i32
    %c0_i32_0 = arith.constant 0 : i32
    %c0_i32_1 = arith.constant 0 : i32
    return %c0_i32, %c0_i32_0 : i32, i32
  }
  func.func @transform_8(%arg0: i32) -> (i32, i32) {
    %c0_i32 = arith.constant 0 : i32
    %c0_i32_0 = arith.constant 0 : i32
    %c0_i32_1 = arith.constant 0 : i32
    return %c0_i32, %c0_i32_0 : i32, i32
  }
  func.func @transform_9(%arg0: i32) -> (i32, i32) {
    %c0_i32 = arith.constant 0 : i32
    %c0_i32_0 = arith.constant 0 : i32
    %c0_i32_1 = arith.constant 0 : i32
    return %c0_i32, %c0_i32_0 : i32, i32
  }
  func.func @transform_10(%arg0: i32) -> (i32, i32) {
    %c0_i32 = arith.constant 0 : i32
    %c0_i32_0 = arith.constant 0 : i32
    %c0_i32_1 = arith.constant 0 : i32
    return %c0_i32, %c0_i32_0 : i32, i32
  }
  func.func @transform_11(%arg0: i32) -> (i32, i32) {
    %c0_i32 = arith.constant 0 : i32
    %c0_i32_0 = arith.constant 0 : i32
    %c0_i32_1 = arith.constant 0 : i32
    return %c0_i32, %c0_i32_0 : i32, i32
  }
  func.func @transform_12(%arg0: i32) -> (i32, i32) {
    %c0_i32 = arith.constant 0 : i32
    %c0_i32_0 = arith.constant 0 : i32
    %c0_i32_1 = arith.constant 0 : i32
    return %c0_i32, %c0_i32_0 : i32, i32
  }
  func.func @transform_13(%arg0: i32) -> (i32, i32) {
    %c0_i32 = arith.constant 0 : i32
    %c0_i32_0 = arith.constant 0 : i32
    return %arg0, %c0_i32 : i32, i32
  }
}

</mosaic_0001>

<bundles_post_ra>
// kernel: tpu_custom_call.1
= control target key start
LH: loop header
LB: loop body
LE: loop exit
PB: predicated region body
PF: predicated region fallthrough
CT: control target
= control target key end

     0   :  { %18 = vsyncpa [#allocation3], 0  ;;  %s1125_s0 = inlined_call_operand.vmem [shape: bf16[8,32], index: 0, kind: input, shape index: {}]   ;;  %s1126_s1 = inlined_call_operand.vmem [shape: bf16[32,64], index: 1, kind: input, shape index: {}]   ;;  %s1127_s2 = inlined_call_operand.vmem [shape: f32[1,64], index: 2, kind: input, shape index: {}]   ;;  %s1128_s3 = inlined_call_operand.vmem [shape: bf16[64,128], index: 3, kind: input, shape index: {}]   ;;  %s1129_s4 = inlined_call_operand.vmem [shape: f32[1,128], index: 4, kind: input, shape index: {}]   ;;  %s1130_s5 = inlined_call_operand.hbm [shape: bf16[128,256], index: 5, kind: input, shape index: {}]   ;;  %s1131_s6 = inlined_call_operand.vmem [shape: f32[1,256], index: 6, kind: input, shape index: {}]   ;;  %s1132_s7 = inlined_call_operand.hbm [shape: bf16[256,128], index: 7, kind: input, shape index: {}]   ;;  %s1133_s8 = inlined_call_operand.vmem [shape: f32[1,128], index: 8, kind: input, shape index: {}]   ;;  %s1134_s9 = inlined_call_operand.vmem [shape: bf16[128,64], index: 9, kind: input, shape index: {}]   ;;  %s1135_s10 = inlined_call_operand.vmem [shape: f32[1,64], index: 10, kind: input, shape index: {}]   ;;  %s1136_s11 = inlined_call_operand.vmem [shape: bf16[64,128], index: 11, kind: input, shape index: {}]   ;;  %s1137_s12 = inlined_call_operand.vmem [shape: f32[1,128], index: 12, kind: input, shape index: {}]   ;;  %s1138_s13 = inlined_call_operand.hbm [shape: f32[8,128], index: 13, kind: output, shape index: {}]  }
   0x1   :  { %19 = vsyncpa [#allocation6], 0 }
   0x2   :  { %20 = vsyncpa [#allocation4], 0  ;;  %s35_s27 = sshll.u32 %s1130_s5, 4  ;;  %s962_s28 = smov [#allocation2]   ;;  %s36_s27 = int_to_ptr.hbm [resolvable:$true] %s35_s27 }
   0x3   :  { %s37_s29 = sshll.u32 %s962_s28, 4  ;;  %s50_s15 = sshll.u32 %s1132_s7, 4  ;;  %s38_s29 = int_to_ptr.vmem [resolvable:$true] %s37_s29  ;;  %s51_s15 = int_to_ptr.hbm [resolvable:$true] %s50_s15 }
   0x4   :  { %s963_s16 = smov 128   ;;  %s964_s17 = smov 8  }
   0x5   :  { %43 = dma.hbm_to_vmem [thread:$0]  %s36_s27, 2048, %s38_s29, [#allocation3], %s963_s16, %s963_s16, %s964_s17  }
   0x6   :  { %s965_s18 = smov [#allocation5]   ;;  %s966_s20 = smov 64  }
   0x7   :  { %s52_s19 = sshll.u32 %s965_s18, 4  ;;  %s967_s21 = smov 4   ;;  %s53_s19 = int_to_ptr.vmem [resolvable:$true] %s52_s19 }
   0x8   :  { %58 = dma.hbm_to_vmem [thread:$0]  %s51_s15, 2048, %s53_s19, [#allocation6], %s966_s20, %s966_s20, %s967_s21  }
   0x9   :  { %956 = dma.done.wait [#allocation3], 2048  }
   0xa   :  { %957 = vsyncadd [#allocation3], 4294965248 }
   0xb   :  { %958 = dma.done.wait [#allocation6], 2048  }
   0xc   :  { %959 = vsyncadd [#allocation6], 4294965248  ;;  %v823_v0 = vld [vmem:[%s1126_s1 + $0x8] sm:$0xff]  ;;  %v827_v1 = vld [vmem:[%s1128_s3 + $0x18] sm:$0xff]  ;;  %vm99_vm0 = vcmask 261120   ;;  %vm154_vm1 = vcmask 523264  }
   0xd   :  { %109 = vmatpush.bf16.msra.mxu0 %v823_v0  ;;  %v822_v2 = vld [vmem:[%s1126_s1] sm:$0xff]  ;;  %162 = vmatpush.bf16.msra.mxu1 %v827_v1  ;;  %v826_v3 = vld [vmem:[%s1128_s3 + $0x10] sm:$0xff]  ;;  %v825_v5 = vld [vmem:[%s1128_s3 + $0x8] sm:$0xff]  ;;  %s968_s21 = smov [#allocation7]   ;;  %s608_s23 = sshll.u32 %s1138_s13, 4  ;;  %s609_s23 = int_to_ptr.hbm [resolvable:$true] %s608_s23 }
   0xe   :  { %v78_v4 = vld [vmem:[%s1125_s0] sm:$0xf]  ;;  %v703_v7 = vld [vmem:[#allocation2 + $0x70] sm:$0xf]  ;;  %v843_v8 = vld [vmem:[#allocation2 + $0x74] sm:$0xf0] }
   0xf   :  { %v824_v6 = vld [vmem:[%s1128_s3] sm:$0xff]  ;;  %v842_v9 = vld [vmem:[#allocation2 + $0x74] sm:$0xf]  ;;  %v704_v10 = vor.u32 %v843_v8, %v703_v7  ;;  %v705_v11 = vld [vmem:[#allocation2 + $0x78] sm:$0xf0]  ;;  %s606_s5 = sshll.u32 %s968_s21, 4  ;;  %s607_s5 = int_to_ptr.vmem [resolvable:$true] %s606_s5 }
  0x10   :  { %v695_v12 = vld [vmem:[#allocation2 + $0x60] sm:$0xf]  ;;  %v841_v13 = vld [vmem:[#allocation2 + $0x64] sm:$0xf0]  ;;  %v708_v14 = vor.u32 %v842_v9, %v705_v11  ;;  %v840_v15 = vld [vmem:[#allocation2 + $0x64] sm:$0xf] }
  0x11   :  { %110 = vmatpush.bf16.msra.mxu0 %v822_v2  ;;  %163 = vmatpush.bf16.msra.mxu1 %v826_v3  ;;  %v697_v16 = vld [vmem:[#allocation2 + $0x68] sm:$0xf0]  ;;  %v696_v17 = vor.u32 %v841_v13, %v695_v12  ;;  %v687_v19 = vld [vmem:[#allocation2 + $0x50] sm:$0xf]  ;;  %v839_v20 = vld [vmem:[#allocation2 + $0x54] sm:$0xf0] }
  0x12   :  { %275 = vmatpush.bf16.msra.mxu2 %v704_v10  ;;  %288 = vmatpush.bf16.msra.mxu3 %v708_v14  ;;  %v700_v18 = vor.u32 %v840_v15, %v697_v16  ;;  %v838_v21 = vld [vmem:[#allocation2 + $0x54] sm:$0xf]  ;;  %v689_v22 = vld [vmem:[#allocation2 + $0x58] sm:$0xf0]  ;;  %v688_v23 = vor.u32 %v839_v20, %v687_v19  ;;  %v679_v25 = vld [vmem:[#allocation2 + $0x40] sm:$0xf] }
  0x13   :  { %v692_v24 = vor.u32 %v838_v21, %v689_v22  ;;  %v837_v26 = vld [vmem:[#allocation2 + $0x44] sm:$0xf0]  ;;  %v836_v27 = vld [vmem:[#allocation2 + $0x44] sm:$0xf]  ;;  %v681_v28 = vld [vmem:[#allocation2 + $0x48] sm:$0xf0] }
  0x14   :  { %627 = vmatmul.msk.bf16.vlgmr.msra.gmra.mxu0 %vm99_vm0, %v78_v4  ;;  %v680_v29 = vor.u32 %v837_v26, %v679_v25  ;;  %v684_v30 = vor.u32 %v836_v27, %v681_v28  ;;  %v671_v31 = vld [vmem:[#allocation2 + $0x30] sm:$0xf]  ;;  %v835_v32 = vld [vmem:[#allocation2 + $0x34] sm:$0xf0]  ;;  %v834_v33 = vld [vmem:[#allocation2 + $0x34] sm:$0xf] }
  0x15   :  { %164 = vmatpush.bf16.msra.mxu1 %v825_v5  ;;  %v673_v34 = vld [vmem:[#allocation2 + $0x38] sm:$0xf0]  ;;  %v672_v35 = vor.u32 %v835_v32, %v671_v31  ;;  %v663_v37 = vld [vmem:[#allocation2 + $0x20] sm:$0xf]  ;;  %v833_v38 = vld [vmem:[#allocation2 + $0x24] sm:$0xf0] }
  0x16   :  { %276 = vmatpush.bf16.msra.mxu2 %v696_v17  ;;  %289 = vmatpush.bf16.msra.mxu3 %v700_v18  ;;  %v676_v36 = vor.u32 %v834_v33, %v673_v34  ;;  %v832_v39 = vld [vmem:[#allocation2 + $0x24] sm:$0xf]  ;;  %v665_v40 = vld [vmem:[#allocation2 + $0x28] sm:$0xf0]  ;;  %v664_v41 = vor.u32 %v833_v38, %v663_v37  ;;  %v879_v43 = vld [vmem:[%s1127_s2] ss:$0 sm:$0xff] }
  0x17   :  { %v668_v42 = vor.u32 %v832_v39, %v665_v40  ;;  %v655_v49 = vld [vmem:[#allocation2 + $0x10] sm:$0xf]  ;;  %v831_v50 = vld [vmem:[#allocation2 + $0x14] sm:$0xf0]  ;;  %v830_v51 = vld [vmem:[#allocation2 + $0x14] sm:$0xf] }
  0x18   :  { %v656_v52 = vor.u32 %v831_v50, %v655_v49  ;;  %v657_v53 = vld [vmem:[#allocation2 + $0x18] sm:$0xf0]  ;;  %v647_v55 = vld [vmem:[#allocation2] sm:$0xf]  ;;  %v829_v56 = vld [vmem:[#allocation2 + $0x4] sm:$0xf0] }
  0x19   :  { %165 = vmatpush.bf16.msra.mxu1 %v824_v6  ;;  %v660_v54 = vor.u32 %v830_v51, %v657_v53  ;;  %v828_v57 = vld [vmem:[#allocation2 + $0x4] sm:$0xf]  ;;  %v648_v58 = vor.u32 %v829_v56, %v647_v55  ;;  %v649_v59 = vld [vmem:[#allocation2 + $0x8] sm:$0xf0]  ;;  %v851_v61 = vld [vmem:[#allocation5 + $0x38] sm:$0xff] }
  0x1a   :  { %277 = vmatpush.bf16.msra.mxu2 %v688_v23  ;;  %290 = vmatpush.bf16.msra.mxu3 %v692_v24  ;;  %v652_v60 = vor.u32 %v828_v57, %v649_v59  ;;  %v859_v62 = vld [vmem:[#allocation5 + $0x78] sm:$0xff]  ;;  %v850_v63 = vld [vmem:[#allocation5 + $0x30] sm:$0xff]  ;;  %v849_v1 = vld [vmem:[#allocation5 + $0x28] sm:$0xff] }
  0x1b   :  { %437 = vmatpush.bf16.msrb.mxu0 %v851_v61  ;;  %v858_v0 = vld [vmem:[#allocation5 + $0x70] sm:$0xff]  ;;  %v857_v2 = vld [vmem:[#allocation5 + $0x68] sm:$0xff]  ;;  %v848_v3 = vld [vmem:[#allocation5 + $0x20] sm:$0xff] }
  0x1c   :  { %v856_v4 = vld [vmem:[#allocation5 + $0x60] sm:$0xff]  ;;  %v847_v5 = vld [vmem:[#allocation5 + $0x18] sm:$0xff]  ;;  %v846_v7 = vld [vmem:[#allocation5 + $0x10] sm:$0xff] }
  0x1d   :  { %450 = vmatpush.bf16.msrb.mxu1 %v859_v62  ;;  %v855_v6 = vld [vmem:[#allocation5 + $0x58] sm:$0xff]  ;;  %v854_v8 = vld [vmem:[#allocation5 + $0x50] sm:$0xff]  ;;  %v880_v9 = vld [vmem:[%s1129_s4] ss:$0 sm:$0xff] }
  0x1e   :  { %278 = vmatpush.bf16.msra.mxu2 %v680_v29  ;;  %291 = vmatpush.bf16.msra.mxu3 %v684_v30  ;;  %v845_v15 = vld [vmem:[#allocation5 + $0x8] sm:$0xff]  ;;  %v844_v17 = vld [vmem:[#allocation5] sm:$0xff]  ;;  %v867_v19 = vld [vmem:[%s1134_s9 + $0x38] sm:$0xff] }
  0x1f   :  { %438 = vmatpush.bf16.msrb.mxu0 %v850_v63  ;;  %v853_v16 = vld [vmem:[#allocation5 + $0x48] sm:$0xff]  ;;  %v852_v18 = vld [vmem:[#allocation5 + $0x40] sm:$0xff]  ;;  %v866_v20 = vld [vmem:[%s1134_s9 + $0x30] sm:$0xff] }
  0x20   :  { %v865_v21 = vld [vmem:[%s1134_s9 + $0x28] sm:$0xff]  ;;  %v864_v22 = vld [vmem:[%s1134_s9 + $0x20] sm:$0xff]  ;;  %v863_v23 = vld [vmem:[%s1134_s9 + $0x18] sm:$0xff] }
  0x21   :  { %451 = vmatpush.bf16.msrb.mxu1 %v858_v0  ;;  %v189_v24 = vld [vmem:[%s1131_s6] sm:$0x3]  ;;  %v862_v25 = vld [vmem:[%s1134_s9 + $0x10] sm:$0xff]  ;;  %v861_v38 = vld [vmem:[%s1134_s9 + $0x8] sm:$0xff] }
  0x22   :  { %279 = vmatpush.bf16.msra.mxu2 %v672_v35  ;;  %292 = vmatpush.bf16.msra.mxu3 %v676_v36  ;;  %v191_v26 = vperm.slane %v189_v24, 0  ;;  %v192_v27 = vperm.slane %v189_v24, 1  ;;  %v860_v39 = vld [vmem:[%s1134_s9] sm:$0xff]  ;;  %v871_v40 = vld [vmem:[%s1136_s11 + $0x18] sm:$0xff] }
  0x23   :  { %439 = vmatpush.bf16.msrb.mxu0 %v849_v1  ;;  %v882_v53 = vld [vmem:[%s1135_s10] ss:$0 sm:$0xff] }
  0x24   :  { %v883_v59 = vld [vmem:[%s1137_s12] ss:$0 sm:$0xff] }
  0x25   :  { %452 = vmatpush.bf16.msrb.mxu1 %v857_v2 }
  0x26   :  { %280 = vmatpush.bf16.msra.mxu2 %v664_v41  ;;  %293 = vmatpush.bf16.msra.mxu3 %v668_v42  ;;  %v870_v41 = vld [vmem:[%s1136_s11 + $0x10] sm:$0xff]  ;;  %v869_v42 = vld [vmem:[%s1136_s11 + $0x8] sm:$0xff] }
  0x27   :  { %440 = vmatpush.bf16.msrb.mxu0 %v848_v3 }
  0x29   :  { %453 = vmatpush.bf16.msrb.mxu1 %v856_v4 }
  0x2a   :  { %281 = vmatpush.bf16.msra.mxu2 %v656_v52  ;;  %294 = vmatpush.bf16.msra.mxu3 %v660_v54  ;;  %v868_v52 = vld [vmem:[%s1136_s11] sm:$0xff] }
  0x2b   :  { %441 = vmatpush.bf16.msrb.mxu0 %v847_v5 }
  0x2d   :  { %454 = vmatpush.bf16.msrb.mxu1 %v855_v6 }
  0x2e   :  { %282 = vmatpush.bf16.msra.mxu2 %v648_v58  ;;  %295 = vmatpush.bf16.msra.mxu3 %v652_v60 }
  0x2f   :  { %442 = vmatpush.bf16.msrb.mxu0 %v846_v7 }
  0x31   :  { %455 = vmatpush.bf16.msrb.mxu1 %v854_v8 }
  0x32   :  { %533 = vmatpush.bf16.msrb.mxu2 %v867_v19  ;;  %591 = vmatpush.bf16.msrb.mxu3 %v871_v40 }
  0x33   :  { %443 = vmatpush.bf16.msrb.mxu0 %v845_v15 }
  0x35   :  { %456 = vmatpush.bf16.msrb.mxu1 %v853_v16 }
  0x36   :  { %534 = vmatpush.bf16.msrb.mxu2 %v866_v20  ;;  %592 = vmatpush.bf16.msrb.mxu3 %v870_v41 }
  0x37   :  { %444 = vmatpush.bf16.msrb.mxu0 %v844_v17 }
  0x39   :  { %457 = vmatpush.bf16.msrb.mxu1 %v852_v18 }
  0x3a   :  { %535 = vmatpush.bf16.msrb.mxu2 %v865_v21  ;;  %593 = vmatpush.bf16.msrb.mxu3 %v869_v42 }
  0x3e   :  { %536 = vmatpush.bf16.msrb.mxu2 %v864_v22  ;;  %594 = vmatpush.bf16.msrb.mxu3 %v868_v52 }
  0x42   :  { %537 = vmatpush.bf16.msrb.mxu2 %v863_v23 }
  0x46   :  { %538 = vmatpush.bf16.msrb.mxu2 %v862_v25 }
  0x4a   :  { %539 = vmatpush.bf16.msrb.mxu2 %v861_v38 }
  0x4e   :  { %540 = vmatpush.bf16.msrb.mxu2 %v860_v39 }
  0x91   :  { %v112_v44 = vpop.f32.mrf.mxu0 }
  0x92   :  { %v113_v45 = vadd.f32 %v879_v43, %v112_v44  ;;  %v881_v43 = vld [vmem:[%s1133_s8] ss:$0 sm:$0xff] }
  0x94   :  { %v116_v46 = vmax.f32 %v113_v45, 0.0 }
  0x96   :  { %v117_v47 = vpack.c.bf16 %v116_v46, %v116_v46 }
  0x98   :  { %644 = vmatmul.msk.bf16.vlgmr.msra.gmra.mxu1 %vm154_vm1, %v117_v47 }
  0x99   :  { %v114_v48 = vpop.f32.mrf.mxu0 }
 0x115   :  { %v167_v10 = vpop.f32.mrf.mxu1 }
 0x116   :  { %v168_v11 = vadd.f32 %v880_v9, %v167_v10 }
 0x118   :  { %v171_v12 = vmax.f32 %v168_v11, 0.0 }
 0x11a   :  { %v172_v13 = vpack.c.bf16 %v171_v12, %v171_v12 }
 0x11c   :  { %283 = vmatmul.bf16.vlgmr.msra.gmra.mxu2 %v172_v13  ;;  %296 = vmatmul.bf16.vlgmr.msra.gmra.mxu3 %v172_v13 }
 0x11d   :  { %v169_v14 = vpop.f32.mrf.mxu1 }
 0x19f   :  { %v284_v28 = vpop.f32.mrf.mxu2  ;;  %v297_v29 = vpop.f32.mrf.mxu3 }
 0x1a0   :  { %v285_v30 = vadd.f32 %v284_v28, %v191_v26  ;;  %v298_v31 = vadd.f32 %v297_v29, %v192_v27 }
 0x1a2   :  { %v301_v32 = vmax.f32 %v285_v30, 0.0  ;;  %v302_v33 = vmax.f32 %v298_v31, 0.0 }
 0x1a4   :  { %v303_v34 = vpack.c.bf16 %v301_v32, %v301_v32  ;;  %v304_v35 = vpack.c.bf16 %v302_v33, %v302_v33 }
 0x1a6   :  { %445 = vmatmul.bf16.vlgmr.msrb.gmra.mxu0 %v303_v34  ;;  %458 = vmatmul.bf16.vlgmr.msrb.gmra.mxu1 %v304_v35 }
 0x1a7   :  { %v286_v36 = vpop.f32.mrf.mxu2  ;;  %v299_v37 = vpop.f32.mrf.mxu3 }
 0x223   :  { %v446_v44 = vpop.f32.mrf.mxu0  ;;  %v459_v45 = vpop.f32.mrf.mxu1 }
 0x224   :  { %v447_v46 = vadd.f32 %v881_v43, %v446_v44 }
 0x226   :  { %v460_v47 = vadd.f32 %v459_v45, %v447_v46 }
 0x228   :  { %v463_v48 = vmax.f32 %v460_v47, 0.0 }
 0x22a   :  { %v464_v49 = vpack.c.bf16 %v463_v48, %v463_v48 }
 0x22b   :  { %v448_v50 = vpop.f32.mrf.mxu0  ;;  %v461_v51 = vpop.f32.mrf.mxu1 }
 0x22c   :  { %541 = vmatmul.bf16.vlgmr.msrb.gmra.mxu2 %v464_v49 }
 0x2af   :  { %v542_v54 = vpop.f32.mrf.mxu2 }
 0x2b0   :  { %v543_v55 = vadd.f32 %v882_v53, %v542_v54 }
 0x2b2   :  { %v546_v56 = vmax.f32 %v543_v55, 0.0 }
 0x2b4   :  { %v547_v57 = vpack.c.bf16 %v546_v56, %v546_v56 }
 0x2b6   :  { %821 = vmatmul.msk.bf16.vlgmr.msrb.gmra.mxu3 %vm154_vm1, %v547_v57 }
 0x2b7   :  { %v544_v58 = vpop.f32.mrf.mxu2 }
 0x339   :  { %v596_v60 = vpop.f32.mrf.mxu3 }
 0x33a   :  { %v597_v61 = vadd.f32 %v883_v59, %v596_v60 }
 0x33c   :  { %600 = vst [vmem:[#allocation7] sm:$0xff] %v597_v61 }
 0x33d   :  { %611 = dma.vmem_to_hbm [thread:$0]  %s607_s5, 128, %s609_s23, [#allocation4]  }
 0x341   :  { %v598_v62 = vpop.f32.mrf.mxu3 }
 0x342   :  { %960 = dma.done.wait [#allocation4], 128  }
 0x343   :  { %961 = vsyncadd [#allocation4], 4294967168 }
 0x344   :  { %616 = vsyncpa [#allocation3], 1 }
 0x345   :  { %617 = vsyncpa [#allocation6], 1 }
 0x346   :  { %618 = vsyncpa [#allocation4], 1 }

</bundles_post_ra>
